<compile_context>
chip_gen: v6e
topology: v6e:2x2x1
jax: 0.10.0
libtpu: 0.0.40
codegen_flags: <defaults>
</compile_context>

<pallas_src>
import functools

import jax
import jax.numpy as jnp
from jax.experimental import pallas as pl
from jax.experimental.pallas import tpu as pltpu


def _pair_indices(num_fields):
    pairs = []
    for i in range(num_fields - 1):
        for j in range(i + 1, num_fields):
            pairs.append((i, j))
    return tuple(pairs)


def _ipn_kernel(x_ref, o_ref, *, pairs, embed_dim, is_sum):
    # x_ref: (TB, F*D) lane-dense batch tile.
    # o_ref: (TB, P) if is_sum else (TB, P*D).
    D = embed_dim
    num_fields = x_ref.shape[1] // D
    # Load each field once via a static lane slice (no gather, no matmul).
    fields = [x_ref[:, k * D:(k + 1) * D] for k in range(num_fields)]

    if is_sum:
        cols = []
        for (i, j) in pairs:  # static unroll over P pairs (compile-time constants)
            prod = fields[i].astype(jnp.float32) * fields[j].astype(jnp.float32)
            cols.append(jnp.sum(prod, axis=-1, keepdims=True))  # (TB, 1)
        out = jnp.concatenate(cols, axis=-1)                     # (TB, P)
    else:
        out = jnp.concatenate(
            [fields[i] * fields[j] for (i, j) in pairs], axis=-1)  # (TB, P*D)

    o_ref[...] = out.astype(o_ref.dtype)


def _auto_batch_tile(batch, in_cols, out_cols, itemsize,
                     vmem_budget_bytes=8 << 20):
    """Largest batch tile whose double-buffered in+out tiles fit the budget."""
    def pad128(c):
        return ((c + 127) // 128) * 128

    bytes_per_row = (pad128(in_cols) + pad128(out_cols)) * itemsize * 2
    tb = vmem_budget_bytes // max(bytes_per_row, 1)
    tb = int(max(8, min(tb, 1024, batch)))
    if tb >= batch:
        return batch
    tb = (tb // 8) * 8
    # Prefer a tile that divides the batch so there is no ragged trailing block.
    while tb > 8 and batch % tb:
        tb -= 8
    return max(tb, 8)


def inner_product_network(x, num_fields, is_sum=True, batch_tile=None):
    B, F, D = x.shape
    assert F == num_fields
    pairs = _pair_indices(num_fields)
    P = len(pairs)
    assert P >= 1, "num_fields must be >= 2"
    FD = F * D
    out_cols = P if is_sum else P * D
    itemsize = jnp.dtype(x.dtype).itemsize

    if batch_tile is None:
        tb = _auto_batch_tile(B, FD, out_cols, itemsize)
    else:
        tb = min(int(batch_tile), B)
        if tb < B:
            tb = max(8, (tb // 8) * 8)  # sublane-aligned tile when not full batch
        else:
            tb = B
    grid = (pl.cdiv(B, tb),)

    # Lane-dense presentation of the input: (B, F*D). Free wrapper-side reshape.
    x2 = x.reshape(B, FD)

    kernel = functools.partial(
        _ipn_kernel, pairs=pairs, embed_dim=D, is_sum=is_sum)

    out = pl.pallas_call(
        kernel,
        out_shape=jax.ShapeDtypeStruct((B, out_cols), x.dtype),
        grid=grid,
        in_specs=[pl.BlockSpec((tb, FD), lambda i: (i, 0))],
        out_specs=pl.BlockSpec((tb, out_cols), lambda i: (i, 0)),
        compiler_params=pltpu.CompilerParams(
            dimension_semantics=("parallel",)),  # batch blocks are independent
    )(x2)

    if is_sum:
        return out                    # (B, P)
    return out.reshape(B, P, D)       # free reshape back to torch layout


if __name__ == "__main__":
    key = jax.random.PRNGKey(0)
    B, F, D = 16, 4, 32  # small shapes consistent with the module
    x = jax.random.normal(key, (B, F, D), dtype=jnp.float32)

    # Multi-block grid (batch_tile=8 -> grid=(2,)) exercises the pipelined path.
    out_sum = inner_product_network(x, num_fields=F, is_sum=True, batch_tile=8)
    out_pair = inner_product_network(x, num_fields=F, is_sum=False, batch_tile=8)
    # Auto-tiled path (single block for this tiny batch).
    out_sum_auto = inner_product_network(x, num_fields=F, is_sum=True)
    jax.block_until_ready((out_sum, out_pair, out_sum_auto))

    # Pure-JAX reference mirroring the PyTorch forward exactly.
    row = jnp.array([i for i in range(F - 1) for j in range(i + 1, F)])
    col = jnp.array([j for i in range(F - 1) for j in range(i + 1, F)])
    ref_pair = x[:, row, :] * x[:, col, :]
    ref_sum = jnp.sum(ref_pair, axis=2)

    P = F * (F - 1) // 2
    assert out_sum.shape == (B, P)
    assert out_pair.shape == (B, P, D)
    assert jnp.allclose(out_sum, ref_sum, atol=1e-5, rtol=1e-5)
    assert jnp.allclose(out_sum_auto, ref_sum, atol=1e-5, rtol=1e-5)
    assert jnp.allclose(out_pair, ref_pair, atol=1e-5, rtol=1e-5)
    print("KERNEL_OK")
</pallas_src>

<mosaic_0001>
module attributes {stable_mosaic.version = 11 : i64} {
  func.func @_ipn_kernel(%arg0: i32, %arg1: memref<8x128xf32, #tpu.memory_space<vmem>>, %arg2: memref<8x6xf32, #tpu.memory_space<vmem>>) attributes {dimension_semantics = [#tpu.dimension_semantics<parallel>], iteration_bounds = array<i64: 2>, scalar_prefetch = 0 : i64, scratch_operands = 0 : i64, tpu.core_type = #tpu.core_type<tc>, window_params = [{transform_indices = @transform_0, window_bounds = array<i64: 8, 128>}, {transform_indices = @transform_1, window_bounds = array<i64: 8, 6>}]} {
    %c0 = arith.constant 0 : index
    %c0_0 = arith.constant 0 : index
    %0 = vector.load %arg1[%c0, %c0_0] : memref<8x128xf32, #tpu.memory_space<vmem>>, vector<8x32xf32>
    %c0_1 = arith.constant 0 : index
    %c32 = arith.constant 32 : index
    %1 = vector.load %arg1[%c0_1, %c32] : memref<8x128xf32, #tpu.memory_space<vmem>>, vector<8x32xf32>
    %c0_2 = arith.constant 0 : index
    %c64 = arith.constant 64 : index
    %2 = vector.load %arg1[%c0_2, %c64] : memref<8x128xf32, #tpu.memory_space<vmem>>, vector<8x32xf32>
    %c0_3 = arith.constant 0 : index
    %c96 = arith.constant 96 : index
    %3 = vector.load %arg1[%c0_3, %c96] : memref<8x128xf32, #tpu.memory_space<vmem>>, vector<8x32xf32>
    %4 = arith.mulf %0, %1 : vector<8x32xf32>
    %cst = arith.constant dense<0.000000e+00> : vector<8xf32>
    %5 = vector.multi_reduction <add>, %4, %cst [1] : vector<8x32xf32> to vector<8xf32>
    %6 = vector.shape_cast %5 : vector<8xf32> to vector<8x1xf32>
    %7 = arith.mulf %0, %2 : vector<8x32xf32>
    %cst_4 = arith.constant dense<0.000000e+00> : vector<8xf32>
    %8 = vector.multi_reduction <add>, %7, %cst_4 [1] : vector<8x32xf32> to vector<8xf32>
    %9 = vector.shape_cast %8 : vector<8xf32> to vector<8x1xf32>
    %10 = arith.mulf %0, %3 : vector<8x32xf32>
    %cst_5 = arith.constant dense<0.000000e+00> : vector<8xf32>
    %11 = vector.multi_reduction <add>, %10, %cst_5 [1] : vector<8x32xf32> to vector<8xf32>
    %12 = vector.shape_cast %11 : vector<8xf32> to vector<8x1xf32>
    %13 = arith.mulf %1, %2 : vector<8x32xf32>
    %cst_6 = arith.constant dense<0.000000e+00> : vector<8xf32>
    %14 = vector.multi_reduction <add>, %13, %cst_6 [1] : vector<8x32xf32> to vector<8xf32>
    %15 = vector.shape_cast %14 : vector<8xf32> to vector<8x1xf32>
    %16 = arith.mulf %1, %3 : vector<8x32xf32>
    %cst_7 = arith.constant dense<0.000000e+00> : vector<8xf32>
    %17 = vector.multi_reduction <add>, %16, %cst_7 [1] : vector<8x32xf32> to vector<8xf32>
    %18 = vector.shape_cast %17 : vector<8xf32> to vector<8x1xf32>
    %19 = arith.mulf %2, %3 : vector<8x32xf32>
    %cst_8 = arith.constant dense<0.000000e+00> : vector<8xf32>
    %20 = vector.multi_reduction <add>, %19, %cst_8 [1] : vector<8x32xf32> to vector<8xf32>
    %21 = vector.shape_cast %20 : vector<8xf32> to vector<8x1xf32>
    %22 = tpu.concatenate %6, %9, %12, %15, %18, %21 in 1 : vector<8x1xf32>, vector<8x1xf32>, vector<8x1xf32>, vector<8x1xf32>, vector<8x1xf32>, vector<8x1xf32> -> vector<8x6xf32>
    %c0_9 = arith.constant 0 : index
    %c0_10 = arith.constant 0 : index
    %23 = vector.load %arg2[%c0_9, %c0_10] : memref<8x6xf32, #tpu.memory_space<vmem>>, vector<8x6xf32>
    tpu.vector_store %arg2[%c0_9, %c0_10], %22 {strides = array<i32>} : memref<8x6xf32, #tpu.memory_space<vmem>>, vector<8x6xf32>,
    return
  }
  func.func @transform_0(%arg0: i32) -> (i32, i32) {
    %c0_i32 = arith.constant 0 : i32
    %c0_i32_0 = arith.constant 0 : i32
    return %arg0, %c0_i32 : i32, i32
  }
  func.func @transform_1(%arg0: i32) -> (i32, i32) {
    %c0_i32 = arith.constant 0 : i32
    %c0_i32_0 = arith.constant 0 : i32
    return %arg0, %c0_i32 : i32, i32
  }
}

</mosaic_0001>

<bundles_post_ra>
// kernel: tpu_custom_call.1
= control target key start
LH: loop header
LB: loop body
LE: loop exit
PB: predicated region body
PF: predicated region fallthrough
CT: control target
= control target key end

     0   :  { %6 = vsyncpa [#allocation3], 0  ;;  %s489_s0 = inlined_call_operand.hbm [shape: f32[16,128], index: 0, kind: input, shape index: {}]   ;;  %s490_s1 = inlined_call_operand.vmem [shape: f32[16,6], index: 1, kind: output, shape index: {}]  }
   0x1   :  { %8 = vsyncpa [#allocation3 + $0x1], 0  ;;  %s383_s6 = smov 0   ;;  %s385_s7 = smov 0  }
   0x2   :  { %s387_s8 = smov 0   ;;  %s389_s9 = smov 0  }
   0x3 LB: > { %s402_s10 = sadd.s32 4294967295, %s367_s9   ;;  %s405_s11 = sadd.s32 1, %s367_s9   ;;  %s367_s9 = sphi %s389_s9, %s500_s9   ;;  %s363_s8 = sphi %s387_s8, %s499_s8   ;;  %s359_s7 = sphi %s385_s7, %s498_s7   ;;  %s355_s6 = sphi %s383_s6, %s497_s6  }
   0x4   : > { %s18_s12 = ssub.s32 %s367_s9, %s405_s11  ;;  %s21_s13 = sadd.s32 1, %s363_s8 }
   0x5   : > { %p19_p0 = scmp.eq.s32.totalorder %s18_s12, 0  ;;  %p28_p1 = scmp.ne.s32.totalorder %s363_s8, %s359_s7 }
   0x6   : > { %p29_p2 = scmp.eq.s32.totalorder %s367_s9, 0  ;;  %p34_p3 = scmp.ne.s32.totalorder %s359_s7, %s355_s6 }
   0x7   : > { %s415_s14 = scalar_select %p19_p0, %s363_s8, %s21_s13  }
   0x8   : > { %p30_p4 = por %p29_p2, %p28_p1  ;;  %p35_p5 = scmp.eq.s32.totalorder %s402_s10, 0 }
   0x9   : > { %p269_p6 = scmp.lt.s32.totalorder %s367_s9, 2  ;;  %s84_s16 = sand.u32 1, %s363_s8  }
   0xa   : > { %p419_p7 = por %p35_p5, %p34_p3  ;;  %s256_s17 = sshll.u32 %s84_s16, 3 }
   0xb   : > { %s257_s18 = sshll.u32 %s367_s9, 7  ;;  %s88_s22 = scalar_lea.vmem [#allocation2], %s256_s17 }
   0xc   : > { %s492_s15 = scalar_select %p419_p7, 1, 0 }
   0xd   : > { %s428_s21 = scalar_lea.hbm %s489_s0, %s257_s18  ;;  %s95_s23 = sshll.u32 %s88_s22, 4  ;;  %s430_s23 = int_to_ptr.vmem [resolvable:$true] %s95_s23 }
   0xe   : > { %p432_p8 = pnand %p269_p6, %p30_p4  ;;  %s85_s25 = scalar_lea.sflag [#allocation3], %s84_s16 }
   0xf   : > { %s305_s26 = scalar_lea.hbm %s428_s21, 128  ;;  %s310_s29 = scalar_lea.hbm %s489_s0, 256 }
  0x10   : > { %p306_p11 = scmp.ne.s32.totalorder %s428_s21, %s305_s26  ;;  %p307_p12 = pneg %p432_p8 }
  0x11   : > { %p311_p1 = scmp.lt.s32.totalorder %s428_s21, %s489_s0  ;;  %p312_p2 = scmp.lt.s32.totalorder %s310_s29, %s305_s26 }
  0x12   : > { %p308_p13 = pnand %p307_p12, %p306_p11 }
  0x13   : > { %p313_p3 = por %p312_p2, %p311_p1 }
  0x14   : > { %p309_p0 = pneg %p308_p13 }
  0x16   : > { %p314_p4 = pnand %p313_p3, %p309_p0 }
  0x18   : > { %317 = shalt.err (!%p314_p4)
}
  0x19   : > { %s318_s3 = scalar_lea.vmem %s430_s23, 128  ;;  %s369_s4 = smov [#allocation2]  }
  0x1a   : > { %p319_p5 = scmp.ne.s32.totalorder %s430_s23, %s318_s3  ;;  %s323_s5 = sshll.u32 %s369_s4, 4  ;;  %s324_s5 = int_to_ptr.vmem [resolvable:$false] %s323_s5 }
  0x1b   : > { %s325_s6 = scalar_lea.vmem %s324_s5, 256  ;;  %p326_p13 = scmp.lt.s32.totalorder %s430_s23, %s324_s5 }
  0x1c   : > { %p321_p6 = pnand %p319_p5, %p307_p12  ;;  %p327_p9 = scmp.lt.s32.totalorder %s325_s6, %s318_s3 }
  0x1e   : > { %p322_p11 = pneg %p321_p6  ;;  %p328_p10 = por %p327_p9, %p326_p13 }
  0x20   : > { %p329_p7 = pnand %p328_p10, %p322_p11 }
  0x22   : > { %332 = shalt.err (!%p329_p7)
}
  0x23   : > { %268 = dma.hbm_to_vmem [thread:$0]  (!%p432_p8), %s428_s21, 128, %s430_s23, %s85_s25  }
  0x24   : > { %p494_p0 = scmp.lt.s32.totalorder %s367_s9, 3  ;;  %p495_p1 = scmp.ge.s32.totalorder %s367_s9, 1 }
  0x26   : > { %p101_p12 = pnand %p495_p1, %p494_p0 }
  0x27   : > { %s106_s12 = sand.u32 (!%p101_p12), 1, %s359_s7   ;;  %p496_p9 = scmp.ne.s32.totalorder (!%p101_p12), %s492_s15, 0 }
  0x28   : > { %104 = sbr.rel (%p101_p12) target bundleno = 428 (0x1ac), region = 24  ;;  %s259_s13 = sshll.u32 (!%p101_p12), %s106_s12, 3 }
  0x29   : > { %s107_s16 = scalar_lea.sflag (!%p101_p12), [#allocation3], %s106_s12  ;;  %s110_s17 = scalar_lea.vmem (!%p101_p12), [#allocation2], %s259_s13 }
  0x2d   : > { %350 = dma.done.wait (%p496_p9), %s107_s16, 128  }
  0x2e   : > { %352 = vsyncadd (%p496_p9), %s107_s16, 4294967168  ;;  %v132_v0 = vld [vmem:[%s110_s17] sm:$0xff]  ;;  %s370_s18 = smov 96   ;;  %s371_s19 = smov 32   ;;  %vm138_vm0 = vcmask 261120   ;;  %vm176_vm1 = vcmask 7168  }
  0x2f   : > { %134 = vrot.lane.b32.xlu0 %v132_v0, %s370_s18  ;;  %149 = vrot.lane.b32.xlu1 %v132_v0, %s371_s19  ;;  %s372_s20 = smov 64   ;;  %p128_p7 = scmp.lt.s32.totalorder %s402_s10, 1  ;;  %vm178_vm2 = vcmask 15360   ;;  %vm180_vm3 = vcmask 23552   ;;  %vm182_vm4 = vcmask 31744   ;;  %vm184_vm5 = vcmask 39936  }
  0x30   : > { %vm186_vm6 = vcmask 48128  }
  0x31   : > { %s502_s10 = smov (!%p128_p7, %s402_s10), 1 }
  0x32   : > { %s260_s9 = sshll.u32 %s502_s10, 3 }
  0x33   : > { %142 = vrot.lane.b32.xlu0 %v132_v0, %s372_s20  ;;  %s131_s22 = scalar_lea.vmem %s490_s1, %s260_s9 }
  0xa1   : > { %v135_v1 = vpop.permute.xlu0 %134  ;;  %v150_v2 = vpop.permute.xlu1 %149 }
  0xa2   : > { %v137_v3 = vmul.f32 %v135_v1, %v132_v0  ;;  %v152_v4 = vmul.f32 %v150_v2, %v132_v0 }
  0xa4   : > { %157 = vrot.lane.b32.xlu0 %v137_v3, %s370_s18  ;;  %v139_v5 = vsel %vm138_vm0, %v137_v3, 0.0  ;;  %v153_v8 = vsel %vm138_vm0, %v152_v4, 0.0 }
  0xa5   : > { %140 = vadd.xlane.f32.xlu1 %v139_v5  ;;  %v143_v6 = vpop.permute.xlu0 %142 }
  0xa6   : > { %v145_v7 = vmul.f32 %v143_v6, %v132_v0 }
  0xa8   : > { %164 = vrot.lane.b32.xlu0 %v145_v7, %s370_s18  ;;  %v146_v9 = vsel %vm138_vm0, %v145_v7, 0.0 }
  0xa9   : > { %154 = vadd.xlane.f32.xlu1 %v153_v8 }
  0xac   : > { %170 = vrot.lane.b32.xlu0 %v137_v3, %s372_s20 }
  0xcb   : > { %147 = vadd.xlane.f32.xlu0 %v146_v9 }
 0x116   : > { %v158_v10 = vpop.permute.xlu0 %157 }
 0x117   : > { %v160_v11 = vsel %vm138_vm0, %v158_v10, 0.0 }
 0x118   : > { %161 = vadd.xlane.f32.xlu0 %v160_v11 }
 0x11a   : > { %v165_v12 = vpop.permute.xlu0 %164 }
 0x11b   : > { %v167_v13 = vsel %vm138_vm0, %v165_v12, 0.0 }
 0x11c   : > { %168 = vadd.xlane.f32.xlu0 %v167_v13 }
 0x11e   : > { %v171_v14 = vpop.permute.xlu0 %170 }
 0x11f   : > { %v173_v15 = vsel %vm138_vm0, %v171_v14, 0.0 }
 0x120   : > { %174 = vadd.xlane.f32.xlu1 %v173_v15 }
 0x12e   : > { %v141_v17 = vpop.xlane.xlu1 %140 }
 0x132   : > { %v155_v20 = vpop.xlane.xlu1 %154 }
 0x154   : > { %v148_v16 = vpop.xlane.xlu0 %147 }
 0x155   : > { %v177_v19 = vsel %vm176_vm1, %v141_v17, %v148_v16 }
 0x156   : > { %v179_v22 = vsel %vm178_vm2, %v177_v19, %v155_v20 }
 0x1a1   : > { %v162_v18 = vpop.xlane.xlu0 %161 }
 0x1a2   : > { %v181_v23 = vsel %vm180_vm3, %v179_v22, %v162_v18 }
 0x1a5   : > { %v169_v21 = vpop.xlane.xlu0 %168 }
 0x1a6   : > { %v183_v24 = vsel %vm182_vm4, %v181_v23, %v169_v21 }
 0x1a9   : > { %v175_v25 = vpop.xlane.xlu1 %174 }
 0x1aa   : > { %v185_v26 = vsel %vm184_vm5, %v183_v24, %v175_v25 }
 0x1ab   : > { %187 = vst.msk [vmem:[%s131_s22] sm:$0xff] %vm186_vm6, %v185_v26 }
 0x1ac PF: > { %p11_p8 = scmp.ge.s32.totalorder %s405_s11, 4   ;;  %s497_s6 = smov %s359_s7 }
 0x1ad   : > { %s498_s7 = smov %s363_s8  ;;  %s499_s8 = smov %s415_s14 }
 0x1ae   : > { %s500_s9 = smov %s405_s11  ;;  %13 = sbr.rel (!%p11_p8) target bundleno = 3 (0x3), region = 64 }
 0x1b3   :  { %207 = vsyncpa [#allocation3], 1 }
 0x1b4   :  { %209 = vsyncpa [#allocation3 + $0x1], 1 }

</bundles_post_ra>
